<compile_context>
chip_gen: v6e
topology: v6e:2x2x1
jax: 0.10.0
libtpu: 0.0.40
codegen_flags: <defaults>
</compile_context>

<pallas_src>
import jax
import jax.numpy as jnp
from jax.experimental import pallas as pl
from jax.experimental.pallas import tpu as pltpu


def _round_up(x, m):
    return (x + m - 1) // m * m


def vbpr_diff_kernel(u_lat_ref, d_lat_ref, u_visa_ref, d_vf_ref, w_ref, out_ref):
    """One batch tile of the vBPR pairwise score difference (minus item bias).

    u_lat:  [bt, K]     user latent factors (f32)
    d_lat:  [bt, K]     I_latent[i] - I_latent[j] (f32)
    u_visa: [bt, D+1]   [user visual factors | 1] (f32)
    d_vf:   [bt, F]     visual_features[i] - visual_features[j] (bf16 or f32)
    w:      [F, D+1]    [proj_w | beta_dash^T] (same dtype as d_vf)
    out:    [1, 1, bt]  lane-dense row of x_ui - x_uj (without item-bias diff)
    """
    # TODO(synk): nn.Dropout(p=0.1) on the projected visual factors is identity
    # in eval mode; train-mode stochastic dropout is not implemented here.
    proj = jnp.dot(d_vf_ref[...], w_ref[...],
                   preferred_element_type=jnp.float32)          # [bt, D+1] f32

    lat_prod = u_lat_ref[...] * d_lat_ref[...]                  # [bt, K]
    vis_prod = u_visa_ref[...] * proj                           # [bt, D+1]

    # Row-oriented reductions: ones(1, C) . X[bt, C]^T -> [1, bt] on the (idle)
    # MXU, so the per-tile result is already a lane-dense row instead of a
    # masked [bt, 1] column.
    ones_k = jnp.ones((1, lat_prod.shape[-1]), jnp.float32)
    ones_d = jnp.ones((1, vis_prod.shape[-1]), jnp.float32)
    lat_row = jnp.einsum("rk,bk->rb", ones_k, lat_prod,
                         preferred_element_type=jnp.float32)    # [1, bt]
    vis_row = jnp.einsum("rd,bd->rb", ones_d, vis_prod,
                         preferred_element_type=jnp.float32)    # [1, bt]

    out_ref[...] = (lat_row + vis_row)[None]                    # [1, 1, bt]


def vbpr_forward(params, visual_features, trg_batch, *,
                 batch_tile=512, f_stream_dtype=jnp.bfloat16):
    """trg_batch: int32 [B, 3] of (user, item_i, item_j). Returns f32 [B]."""
    B = int(trg_batch.shape[0])
    K = int(params["U_latent"].shape[1])
    D = int(params["U_visual"].shape[1])
    Fdim = int(visual_features.shape[1])
    f_bytes = jnp.finfo(f_stream_dtype).bits // 8

    # ---- batch tile selection -------------------------------------------------
    bt = max(8, min(int(batch_tile), _round_up(B, 8)))
    bt = _round_up(bt, 8)
    if _round_up(B, 8) >= 16:
        # v7x has 2 TensorCores: keep >= 2 grid steps so the "parallel" batch
        # axis has work to shard (a no-op on single-TC v5e/v6e).
        bt = min(bt, max(8, _round_up(pl.cdiv(B, 2), 8)))

    # VMEM budget: clamp to ~75% of the chip's physical VMEM (64 MiB/TC on v7x,
    # 128 MiB on v5e/v6e) and shrink the tile until the double-buffered row
    # streams plus the resident (double-buffered) W_aug block fit.
    try:
        vmem_cap = int(getattr(pltpu.get_tpu_info(), "vmem_capacity_bytes",
                               64 * 1024 * 1024))
    except Exception:
        vmem_cap = 64 * 1024 * 1024
    budget = (3 * vmem_cap) // 4
    w_resident = 2 * (f_bytes * Fdim * (D + 1))
    # NOTE: pipeline_mode=pl.Buffered(1) on the constant W_aug spec would halve
    # w_resident on v7x; omitted here for portability across jax versions.

    def _vmem_need(bt_):
        stream = bt_ * (4 * (2 * K + D + 1) + f_bytes * Fdim) + 4 * bt_
        return 2 * stream + w_resident            # double-buffered row streams

    while bt > 8 and _vmem_need(bt) > budget:
        bt = _round_up(bt // 2, 8)

    B_pad = _round_up(B, bt)
    grid = (B_pad // bt,)

    # ---- JAX glue: pad the tiny index vectors (NOT the gathered arrays), then
    # gather + difference.  user_bias and the projection bias cancel exactly in
    # x_ui - x_uj and never enter the kernel; item_bias is added after the call.
    u = trg_batch[:, 0]
    it_i = trg_batch[:, 1]
    it_j = trg_batch[:, 2]
    if B_pad != B:
        zpad = jnp.zeros((B_pad - B,), trg_batch.dtype)
        u_p, i_p, j_p = tuple(jnp.concatenate([v, zpad]) for v in (u, it_i, it_j))
    else:
        u_p, i_p, j_p = u, it_i, it_j

    u_lat = params["U_latent"][u_p]                                   # [Bp, K]
    d_lat = params["I_latent"][i_p] - params["I_latent"][j_p]         # [Bp, K]
    u_vis_aug = jnp.concatenate(
        [params["U_visual"][u_p], jnp.ones((B_pad, 1), jnp.float32)], axis=1)
    d_vf = (visual_features[i_p] - visual_features[j_p]).astype(f_stream_dtype)
    w_aug = jnp.concatenate(
        [params["proj_w"], params["beta_dash"].T], axis=1).astype(f_stream_dtype)

    flops = (2 * B_pad * Fdim * (D + 1)            # projection matmul
             + 4 * B_pad * (K + D + 1))            # elementwise + row reductions
    bytes_accessed = (4 * B_pad * (2 * K + D + 1) + f_bytes * B_pad * Fdim
                      + f_bytes * Fdim * (D + 1) + 4 * B_pad)
    vmem_limit = int(min(budget, max(32 * 1024 * 1024, 2 * _vmem_need(bt))))

    def row_spec(cols):
        return pl.BlockSpec((bt, cols), lambda b: (b, 0))

    out3d = pl.pallas_call(
        vbpr_diff_kernel,
        out_shape=jax.ShapeDtypeStruct((B_pad // bt, 1, bt), jnp.float32),
        grid=grid,
        in_specs=[row_spec(K), row_spec(K), row_spec(D + 1), row_spec(Fdim),
                  pl.BlockSpec((Fdim, D + 1), lambda b: (0, 0))],
        out_specs=pl.BlockSpec((1, 1, bt), lambda b: (b, 0, 0)),
        compiler_params=pltpu.CompilerParams(
            dimension_semantics=("parallel",),
            vmem_limit_bytes=vmem_limit),
        cost_estimate=pl.CostEstimate(
            flops=int(flops), transcendentals=0,
            bytes_accessed=int(bytes_accessed)),
    )(u_lat, d_lat, u_vis_aug, d_vf, w_aug)

    # Item-bias difference is a [B]-vector add; doing it here removes a padded,
    # lane-sparse (bt, 1) input stream from the kernel.
    d_bias = params["item_bias"][it_i] - params["item_bias"][it_j]     # [B]
    # PyTorch's .squeeze() calls make forward return [batch]; match that.
    return out3d.reshape(B_pad)[:B] + d_bias


def vbpr_reference(params, visual_features, trg_batch):
    """Pure-JAX reference (full, un-reformulated math) for correctness checks."""
    def get_xui(u, it):
        vf = visual_features[it]
        proj = vf @ params["proj_w"] + params["proj_b"][0]  # eval-mode dropout = id
        return (params["user_bias"][u]
                + params["item_bias"][it]
                + jnp.sum(params["U_latent"][u] * params["I_latent"][it], axis=-1)
                + jnp.sum(params["U_visual"][u] * proj, axis=-1)
                + jnp.sum(vf * params["beta_dash"][0], axis=-1))
    u = trg_batch[:, 0]
    return get_xui(u, trg_batch[:, 1]) - get_xui(u, trg_batch[:, 2])


def init_params(key, n_u, n_i, K, D, F):
    mean, stddev = 0.0, 0.01  # get_config()
    ks = jax.random.split(key, 8)
    norm = lambda k, shape: mean + stddev * jax.random.normal(k, shape, jnp.float32)
    return {
        "U_latent": norm(ks[0], (n_u, K)),
        "I_latent": norm(ks[1], (n_i, K)),
        "U_visual": norm(ks[2], (n_u, D)),
        # nn.Linear(F, D): weight is [D, F]; store transposed [F, D] for x @ W.
        "proj_w": norm(ks[3], (F, D)),
        "proj_b": norm(ks[4], (1, D)),
        "beta_dash": norm(ks[5], (1, F)),
        "user_bias": norm(ks[6], (n_u,)),
        "item_bias": norm(ks[7], (n_i,)),
    }


if __name__ == "__main__":
    key = jax.random.PRNGKey(0)
    n_u, n_i = 32, 64
    K, D, F = 16, 32, 64   # latent, visual, embedding factors

    k_params, k_vf, k_b1, k_b2 = jax.random.split(key, 4)
    params = init_params(k_params, n_u, n_i, K, D, F)
    visual_features = 0.01 * jax.random.normal(k_vf, (n_i, F), jnp.float32)

    def make_batch(k, B):
        ku, ki, kj = jax.random.split(k, 3)
        return jnp.stack([jax.random.randint(ku, (B,), 0, n_u),
                          jax.random.randint(ki, (B,), 0, n_i),
                          jax.random.randint(kj, (B,), 0, n_i)],
                         axis=1).astype(jnp.int32)

    tb1 = make_batch(k_b1, 8)    # single tile
    tb2 = make_batch(k_b2, 37)   # index padding + multi-step "parallel" grid

    ref1 = vbpr_reference(params, visual_features, tb1)
    ref2 = vbpr_reference(params, visual_features, tb2)

    # Exact-math path (f32 streams): tight check of the reformulated kernel.
    out1_f32 = jax.block_until_ready(
        vbpr_forward(params, visual_features, tb1, f_stream_dtype=jnp.float32))
    assert out1_f32.shape == (8,)
    assert jnp.allclose(out1_f32, ref1, atol=1e-5, rtol=1e-4), (out1_f32, ref1)

    # Default fast path (bf16 on the F-wide streams): bf16-level tolerance.
    out1 = jax.block_until_ready(vbpr_forward(params, visual_features, tb1))
    out2 = jax.block_until_ready(
        vbpr_forward(params, visual_features, tb2, batch_tile=16))
    assert out1.shape == (8,)
    assert out2.shape == (37,)
    assert jnp.allclose(out1, ref1, atol=5e-4, rtol=2e-2), (out1, ref1)
    assert jnp.allclose(out2, ref2, atol=5e-4, rtol=2e-2), (out2, ref2)

    print("KERNEL_OK")
</pallas_src>

<mosaic_0001>
module attributes {stable_mosaic.version = 11 : i64} {
  func.func @vbpr_diff_kernel(%arg0: i32, %arg1: memref<8x16xf32, #tpu.memory_space<vmem>>, %arg2: memref<8x16xf32, #tpu.memory_space<vmem>>, %arg3: memref<8x33xf32, #tpu.memory_space<vmem>>, %arg4: memref<8x64xf32, #tpu.memory_space<vmem>>, %arg5: memref<64x33xf32, #tpu.memory_space<vmem>>, %arg6: memref<1x1x8xf32, #tpu.memory_space<vmem>>) attributes {dimension_semantics = [#tpu.dimension_semantics<parallel>], iteration_bounds = array<i64: 1>, scalar_prefetch = 0 : i64, scratch_operands = 0 : i64, tpu.core_type = #tpu.core_type<tc>, window_params = [{transform_indices = @transform_0, window_bounds = array<i64: 8, 16>}, {transform_indices = @transform_1, window_bounds = array<i64: 8, 16>}, {transform_indices = @transform_2, window_bounds = array<i64: 8, 33>}, {transform_indices = @transform_3, window_bounds = array<i64: 8, 64>}, {pipeline_mode = #tpu.pipeline_mode<synchronous>, transform_indices = @transform_4, window_bounds = array<i64: 64, 33>}, {transform_indices = @transform_5, window_bounds = array<i64: 1, 1, 8>}]} {
    %c0 = arith.constant 0 : index
    %c0_0 = arith.constant 0 : index
    %0 = vector.load %arg4[%c0, %c0_0] : memref<8x64xf32, #tpu.memory_space<vmem>>, vector<8x64xf32>
    %c0_1 = arith.constant 0 : index
    %c0_2 = arith.constant 0 : index
    %1 = vector.load %arg5[%c0_1, %c0_2] : memref<64x33xf32, #tpu.memory_space<vmem>>, vector<64x33xf32>
    %cst = arith.constant dense<0.000000e+00> : vector<8x33xf32>
    %2 = tpu.matmul %0, %1, %cst {dimension_numbers = #tpu.dot_dimension_numbers<[1], [0], [0], [1], [0, 0, 1, 1], [], []>} : vector<8x64xf32>, vector<64x33xf32>, vector<8x33xf32> -> vector<8x33xf32>
    %c0_3 = arith.constant 0 : index
    %c0_4 = arith.constant 0 : index
    %3 = vector.load %arg1[%c0_3, %c0_4] : memref<8x16xf32, #tpu.memory_space<vmem>>, vector<8x16xf32>
    %c0_5 = arith.constant 0 : index
    %c0_6 = arith.constant 0 : index
    %4 = vector.load %arg2[%c0_5, %c0_6] : memref<8x16xf32, #tpu.memory_space<vmem>>, vector<8x16xf32>
    %5 = arith.mulf %3, %4 : vector<8x16xf32>
    %c0_7 = arith.constant 0 : index
    %c0_8 = arith.constant 0 : index
    %6 = vector.load %arg3[%c0_7, %c0_8] : memref<8x33xf32, #tpu.memory_space<vmem>>, vector<8x33xf32>
    %7 = arith.mulf %6, %2 : vector<8x33xf32>
    %cst_9 = arith.constant 1.000000e+00 : f32
    %8 = vector.broadcast %cst_9 : f32 to vector<1x16xf32>
    %cst_10 = arith.constant 1.000000e+00 : f32
    %9 = vector.broadcast %cst_10 : f32 to vector<1x33xf32>
    "tpu.trace_start"() <{level = 10 : i32, message = "rk,bk->rb"}> : () -> ()
    %cst_11 = arith.constant dense<0.000000e+00> : vector<1x8xf32>
    %10 = tpu.matmul %8, %5, %cst_11 {dimension_numbers = #tpu.dot_dimension_numbers<[1], [1], [0], [0], [0, 0, 1, 0], [], []>} : vector<1x16xf32>, vector<8x16xf32>, vector<1x8xf32> -> vector<1x8xf32>
    "tpu.trace_stop"() : () -> ()
    "tpu.trace_start"() <{level = 10 : i32, message = "rd,bd->rb"}> : () -> ()
    %cst_12 = arith.constant dense<0.000000e+00> : vector<1x8xf32>
    %11 = tpu.matmul %9, %7, %cst_12 {dimension_numbers = #tpu.dot_dimension_numbers<[1], [1], [0], [0], [0, 0, 1, 0], [], []>} : vector<1x33xf32>, vector<8x33xf32>, vector<1x8xf32> -> vector<1x8xf32>
    "tpu.trace_stop"() : () -> ()
    %12 = arith.addf %10, %11 : vector<1x8xf32>
    %13 = vector.shape_cast %12 : vector<1x8xf32> to vector<1x1x8xf32>
    %c0_13 = arith.constant 0 : index
    %c0_14 = arith.constant 0 : index
    %c0_15 = arith.constant 0 : index
    %14 = vector.load %arg6[%c0_13, %c0_14, %c0_15] : memref<1x1x8xf32, #tpu.memory_space<vmem>>, vector<1x1x8xf32>
    tpu.vector_store %arg6[%c0_13, %c0_14, %c0_15], %13 {strides = array<i32>} : memref<1x1x8xf32, #tpu.memory_space<vmem>>, vector<1x1x8xf32>,
    return
  }
  func.func @transform_0(%arg0: i32) -> (i32, i32) {
    %c0_i32 = arith.constant 0 : i32
    %c0_i32_0 = arith.constant 0 : i32
    return %arg0, %c0_i32 : i32, i32
  }
  func.func @transform_1(%arg0: i32) -> (i32, i32) {
    %c0_i32 = arith.constant 0 : i32
    %c0_i32_0 = arith.constant 0 : i32
    return %arg0, %c0_i32 : i32, i32
  }
  func.func @transform_2(%arg0: i32) -> (i32, i32) {
    %c0_i32 = arith.constant 0 : i32
    %c0_i32_0 = arith.constant 0 : i32
    return %arg0, %c0_i32 : i32, i32
  }
  func.func @transform_3(%arg0: i32) -> (i32, i32) {
    %c0_i32 = arith.constant 0 : i32
    %c0_i32_0 = arith.constant 0 : i32
    return %arg0, %c0_i32 : i32, i32
  }
  func.func @transform_4(%arg0: i32) -> (i32, i32) {
    %c0_i32 = arith.constant 0 : i32
    %c0_i32_0 = arith.constant 0 : i32
    %c0_i32_1 = arith.constant 0 : i32
    return %c0_i32, %c0_i32_0 : i32, i32
  }
  func.func @transform_5(%arg0: i32) -> (i32, i32, i32) {
    %c0_i32 = arith.constant 0 : i32
    %c0_i32_0 = arith.constant 0 : i32
    %c0_i32_1 = arith.constant 0 : i32
    return %arg0, %c0_i32, %c0_i32_0 : i32, i32, i32
  }
}

</mosaic_0001>

<bundles_post_ra>
// kernel: tpu_custom_call.1
= control target key start
LH: loop header
LB: loop body
LE: loop exit
PB: predicated region body
PF: predicated region fallthrough
CT: control target
= control target key end

     0   :  { %v351_v1 = vmov 0.0   ;;  %vm352_vm0 = vmmov 0   ;;  %s427_s0 = inlined_call_operand.vmem [shape: f32[8,16], index: 0, kind: input, shape index: {}]   ;;  %s428_s1 = inlined_call_operand.vmem [shape: f32[8,16], index: 1, kind: input, shape index: {}]   ;;  %s429_s2 = inlined_call_operand.vmem [shape: f32[8,33], index: 2, kind: input, shape index: {}]   ;;  %s430_s3 = inlined_call_operand.vmem [shape: f32[8,64], index: 3, kind: input, shape index: {}]   ;;  %s431_s4 = inlined_call_operand.vmem [shape: f32[64,33], index: 4, kind: input, shape index: {}]   ;;  %s432_s5 = inlined_call_operand.hbm [shape: f32[1,1,8], index: 5, kind: output, shape index: {}]  }
   0x1   :  { %v29_v0 = vld [vmem:[%s431_s4 + $0x38] sm:$0xff]  ;;  %296 = vmatprep.subr.mxu0 %v351_v1  ;;  %v28_v2 = vld [vmem:[%s431_s4 + $0x30] sm:$0xff]  ;;  %312 = vmatprep.mubr.msk.f32.mxu0 %vm352_vm0, %v351_v1  ;;  %v27_v3 = vld [vmem:[%s431_s4 + $0x28] sm:$0xff] }
   0x2   :  { %297 = vmatpush3.msra.mxu0 %v29_v0  ;;  %315 = vmatprep.subr.mxu1 %v351_v1 }
   0x3   :  { %298 = vmatprep.subr.mxu0 %v351_v1  ;;  %317 = vmatprep.mubr.msk.f32.mxu1 %vm352_vm0, %v351_v1 }
   0x4   :  { %10 = vsyncpa [#allocation3], 0  ;;  %299 = vmatpush3.msra.mxu0 %v28_v2  ;;  %v26_v4 = vld [vmem:[%s431_s4 + $0x20] sm:$0xff]  ;;  %v25_v5 = vld [vmem:[%s431_s4 + $0x18] sm:$0xff]  ;;  %vm30_vm1 = vcmask 523264   ;;  %vm109_vm2 = vcmask 269312  }
   0x5   :  { %300 = vmatprep.subr.mxu0 %v351_v1  ;;  %v24_v6 = vld [vmem:[%s431_s4 + $0x10] sm:$0xff]  ;;  %v23_v7 = vld [vmem:[%s431_s4 + $0x8] sm:$0xff]  ;;  %v22_v8 = vld [vmem:[%s431_s4] sm:$0xff]  ;;  %vm186_vm3 = vcmask 130048   ;;  %v353_v17 = vmov 1.0   ;;  %vm262_vm4 = vcmask 57344  }
   0x6   :  { %301 = vmatpush3.msra.mxu0 %v27_v3  ;;  %v21_v9 = vld [vmem:[%s430_s3] sm:$0xff] }
   0x7   :  { %302 = vmatprep.subr.mxu0 %v351_v1  ;;  %v107_v10 = vld [vmem:[%s429_s2] sm:$0xff]  ;;  %s354_s2 = smov [#allocation2]  }
   0x8   :  { %303 = vmatpush3.msra.mxu0 %v26_v4  ;;  %v104_v12 = vld [vmem:[%s427_s0] sm:$0xff]  ;;  %s270_s0 = sshll.u32 %s354_s2, 4  ;;  %s271_s0 = int_to_ptr.vmem [resolvable:$true] %s270_s0 }
   0x9   :  { %304 = vmatprep.subr.mxu0 %v351_v1  ;;  %v105_v13 = vld [vmem:[%s428_s1] sm:$0xff]  ;;  %s329_s1 = scalar_lea.vmem %s271_s0, 16  ;;  %s333_s3 = scalar_lea.vmem %s271_s0, 32 }
   0xa   :  { %305 = vmatpush3.msra.mxu0 %v25_v5  ;;  %v106_v16 = vmul.f32 %v105_v13, %v104_v12  ;;  %p330_p0 = scmp.ne.s32.totalorder %s271_s0, %s329_s1  ;;  %p334_p1 = scmp.lt.s32.totalorder %s271_s0, %s271_s0 }
   0xb   :  { %306 = vmatprep.subr.mxu0 %v351_v1  ;;  %p335_p2 = scmp.lt.s32.totalorder %s333_s3, %s329_s1 }
   0xc   :  { %307 = vmatpush3.msra.mxu0 %v24_v6 }
   0xd   :  { %308 = vmatprep.subr.mxu0 %v351_v1  ;;  %p336_p3 = por %p335_p2, %p334_p1 }
   0xe   :  { %309 = vmatpush3.msra.mxu0 %v23_v7 }
   0xf   :  { %310 = vmatprep.subr.mxu0 %v351_v1  ;;  %p337_p4 = pnand %p336_p3, %p330_p0 }
  0x10   :  { %311 = vmatpush3.msra.mxu0 %v22_v8 }
  0x11   :  { %313 = vmatmul.mubr.msk.f32.vlgmr.msra.gmra.mxu0 %vm30_vm1, %v21_v9 }
  0xd1   :  { %v100_v11 = vpop.f32.mrf.mxu0 }
  0xd2   :  { %v108_v14 = vmul.f32 %v107_v10, %v100_v11 }
  0xd3   :  { %v314_v15 = vpop.f32.mrf.mxu0 }
  0xd4   :  { %316 = vmatpush3.xpose.msk.msra.mxu1 %vm109_vm2, %v108_v14 }
  0xd5   :  { %320 = vmatprep.subr.mxu1 %v351_v1 }
  0xd7   :  { %318 = vmatmul.mubr.msk.f32.vlgmr.msra.gmra.mxu1 %vm109_vm2, %v353_v17 }
  0xd8   :  { %321 = vmatpush3.xpose.msk.msra.mxu1 %vm186_vm3, %v106_v16  ;;  %322 = vmatprep.mubr.msk.f32.mxu1 %vm352_vm0, %v351_v1 }
  0xdb   :  { %323 = vmatmul.mubr.msk.f32.vlgmr.msra.gmra.mxu1 %vm186_vm3, %v353_v17 }
 0x197   :  { %v182_v18 = vpop.f32.mrf.mxu1 }
 0x199   :  { %v319_v19 = vpop.f32.mrf.mxu1 }
 0x19b   :  { %v258_v20 = vpop.f32.mrf.mxu1 }
 0x19c   :  { %v259_v21 = vadd.f32 %v258_v20, %v182_v18 }
 0x19d   :  { %v324_v22 = vpop.f32.mrf.mxu1 }
 0x19e   :  { %263 = vst.msk [vmem:[#allocation2] sm:$0x1] %vm262_vm4, %v259_v21 }
 0x19f   :  { %340 = shalt.err (!%p337_p4)
}
 0x1a0   :  { %273 = dma.vmem_to_hbm [thread:$0]  %s271_s0, 16, %s432_s5, [#allocation3]  }
 0x1a1   :  { %349 = dma.done.wait [#allocation3], 16  }
 0x1a2   :  { %350 = vsyncadd [#allocation3], 4294967280 }
 0x1a3   :  { %277 = vsyncpa [#allocation3], 1 }

</bundles_post_ra>
